<compile_context>
chip_gen: v7x
topology: tpu7x:2x2x1
jax: 0.10.0
libtpu: 0.0.40
codegen_flags: <defaults>
</compile_context>

<pallas_src>
import jax
import jax.numpy as jnp
from jax.experimental import pallas as pl
from jax.experimental.pallas import tpu as pltpu

_LANES = 128
_SUBLANES = 8
_TILE_BYTES = 4 << 20  # ~4 MiB per input tile -> ~8 MiB HBM traffic per grid step


def _make_snake_kernel(alpha: float, inv_alpha: float):
    """Elementwise Snake kernel with constants baked in at trace time."""

    def kernel(x_ref, o_ref):
        xf = x_ref[...].astype(jnp.float32)
        s = jnp.sin(alpha * xf)
        o_ref[...] = (xf + inv_alpha * (s * s)).astype(o_ref.dtype)

    return kernel


def _choose_tile_rows(rows: int, itemsize: int, block_rows=None) -> int:
    """Pick a row tile: multiple of 8, ~_TILE_BYTES, and >= ~4 grid steps when big."""
    if block_rows is None:
        block_rows = max(_TILE_BYTES // (_LANES * itemsize), _SUBLANES)
    tr = min(int(block_rows), rows)
    min_steps = 4  # ensure the parallel axis shards across v7x's 2 TensorCores
    if rows >= min_steps * _SUBLANES:
        cap = max((pl.cdiv(rows, min_steps) // _SUBLANES) * _SUBLANES, _SUBLANES)
        tr = min(tr, cap)
        tr = max((tr // _SUBLANES) * _SUBLANES, _SUBLANES)
    else:
        tr = rows  # tiny input: single full block (block_shape == full dims is legal)
    return tr


def _snake_2d(x2d: jnp.ndarray, alpha: float, inv_alpha: float, block_rows=None) -> jnp.ndarray:
    rows, lanes = x2d.shape
    assert lanes == _LANES
    itemsize = jnp.dtype(x2d.dtype).itemsize
    tr = _choose_tile_rows(rows, itemsize, block_rows)
    grid = (pl.cdiv(rows, tr),)

    tile_bytes = tr * _LANES * itemsize
    # in + out, double-buffered, plus headroom.
    vmem_limit = int(4 * tile_bytes + (8 << 20))

    n = rows * _LANES
    cost = pl.CostEstimate(
        flops=4 * n,
        transcendentals=n,
        bytes_accessed=2 * n * itemsize,
    )

    kernel = _make_snake_kernel(alpha, inv_alpha)
    return pl.pallas_call(
        kernel,
        out_shape=jax.ShapeDtypeStruct((rows, _LANES), x2d.dtype),
        grid=grid,
        in_specs=[pl.BlockSpec((tr, _LANES), lambda i: (i, 0))],
        out_specs=pl.BlockSpec((tr, _LANES), lambda i: (i, 0)),
        compiler_params=pltpu.CompilerParams(
            dimension_semantics=("parallel",),
            vmem_limit_bytes=vmem_limit,
        ),
        cost_estimate=cost,
    )(x2d)


def _snake_jnp_tail(x_flat: jnp.ndarray, alpha: float, inv_alpha: float) -> jnp.ndarray:
    """Tiny (<128-element) ragged-tail epilogue in plain jnp, matching kernel math."""
    xf = x_flat.astype(jnp.float32)
    s = jnp.sin(alpha * xf)
    return (xf + inv_alpha * (s * s)).astype(x_flat.dtype)


def snake(x: jnp.ndarray, alpha: float = 1.0, *, block_rows=None) -> jnp.ndarray:
    """Snake activation. x: NCHW (or any shape); elementwise."""
    if alpha == 0.0:
        raise ValueError("Snake: alpha must be non-zero (1/alpha is used).")
    alpha = float(alpha)
    inv_alpha = 1.0 / alpha

    orig_shape = x.shape
    total = x.size
    if total == 0:
        return x

    x_flat = jnp.ravel(x)
    tail = total % _LANES
    prefix = total - tail

    if tail == 0:
        # Zero-copy path: lane-dense (rows, 128) view of the whole array.
        rows = total // _LANES
        out2d = _snake_2d(x_flat.reshape(rows, _LANES), alpha, inv_alpha, block_rows)
        return out2d.reshape(orig_shape)

    if prefix == 0:
        # Whole array is smaller than one lane row; just do it in jnp.
        return _snake_jnp_tail(x_flat, alpha, inv_alpha).reshape(orig_shape)

    # Unaligned: kernel on the 128-aligned prefix, jnp epilogue on the <128 tail.
    rows = prefix // _LANES
    head_out = _snake_2d(
        x_flat[:prefix].reshape(rows, _LANES), alpha, inv_alpha, block_rows
    ).reshape(-1)
    tail_out = _snake_jnp_tail(x_flat[prefix:], alpha, inv_alpha)
    return jnp.concatenate([head_out, tail_out]).reshape(orig_shape)


def snake_ref(x, alpha=1.0):
    xf = x.astype(jnp.float32)
    s = jnp.sin(alpha * xf)
    return (xf + (1.0 / alpha) * s ** 2).astype(x.dtype)


if __name__ == "__main__":
    key = jax.random.PRNGKey(0)
    k1, k2, k3, k4 = jax.random.split(key, 4)

    # 1) Small NCHW, 128-aligned (zero-copy path, grid=1).
    x1 = jax.random.normal(k1, (2, 4, 16, 16), dtype=jnp.float32)
    y1 = jax.block_until_ready(snake(x1, alpha=1.0))
    assert y1.shape == x1.shape and y1.dtype == x1.dtype
    assert jnp.allclose(y1, snake_ref(x1, alpha=1.0), atol=1e-5, rtol=1e-5)

    # 2) Medium NCHW, 128-aligned, multi-block grid (exercises tiling / parallel axis).
    x2 = jax.random.normal(k2, (2, 8, 64, 64), dtype=jnp.float32)
    y2 = jax.block_until_ready(snake(x2, alpha=0.7))
    assert y2.shape == x2.shape and y2.dtype == x2.dtype
    assert jnp.allclose(y2, snake_ref(x2, alpha=0.7), atol=1e-5, rtol=1e-5)

    # 3) Unaligned total + small alpha (prefix kernel + ragged tail epilogue,
    #    also checks the small-alpha accuracy concern with the sin^2 form).
    x3 = jax.random.normal(k3, (2, 3, 5, 7), dtype=jnp.float32)
    y3 = jax.block_until_ready(snake(x3, alpha=0.05))
    assert y3.shape == x3.shape and y3.dtype == x3.dtype
    assert jnp.allclose(y3, snake_ref(x3, alpha=0.05), atol=1e-5, rtol=1e-5)

    # 4) bf16 input (HBM tiles stay bf16; math in f32, cast back on store).
    x4 = jax.random.normal(k4, (4, 4, 8, 16), dtype=jnp.bfloat16)
    y4 = jax.block_until_ready(snake(x4, alpha=2.0))
    assert y4.shape == x4.shape and y4.dtype == x4.dtype
    assert jnp.allclose(
        y4.astype(jnp.float32),
        snake_ref(x4, alpha=2.0).astype(jnp.float32),
        atol=5e-2, rtol=5e-2,
    )

    print("KERNEL_OK")
</pallas_src>

<mosaic_0001>
module attributes {stable_mosaic.version = 11 : i64} {
  func.func @kernel(%arg0: i32, %arg1: memref<16x128xf32, #tpu.memory_space<vmem>>, %arg2: memref<16x128xf32, #tpu.memory_space<vmem>>) attributes {dimension_semantics = [#tpu.dimension_semantics<parallel>], iteration_bounds = array<i64: 1>, scalar_prefetch = 0 : i64, scratch_operands = 0 : i64, tpu.core_type = #tpu.core_type<tc>, window_params = [{transform_indices = @transform_0, window_bounds = array<i64: 16, 128>}, {transform_indices = @transform_1, window_bounds = array<i64: 16, 128>}]} {
    %c0 = arith.constant 0 : index
    %c0_0 = arith.constant 0 : index
    %0 = vector.load %arg1[%c0, %c0_0] : memref<16x128xf32, #tpu.memory_space<vmem>>, vector<16x128xf32>
    %cst = arith.constant 1.000000e+00 : f32
    %1 = vector.broadcast %cst : f32 to vector<16x128xf32>
    %2 = arith.mulf %1, %0 : vector<16x128xf32>
    %3 = math.sin %2 : vector<16x128xf32>
    %4 = arith.mulf %3, %3 : vector<16x128xf32>
    %cst_1 = arith.constant 1.000000e+00 : f32
    %5 = vector.broadcast %cst_1 : f32 to vector<16x128xf32>
    %6 = arith.mulf %5, %4 : vector<16x128xf32>
    %7 = arith.addf %0, %6 : vector<16x128xf32>
    %c0_2 = arith.constant 0 : index
    %c0_3 = arith.constant 0 : index
    %8 = vector.load %arg2[%c0_2, %c0_3] : memref<16x128xf32, #tpu.memory_space<vmem>>, vector<16x128xf32>
    tpu.vector_store %arg2[%c0_2, %c0_3], %7 {strides = array<i32>} : memref<16x128xf32, #tpu.memory_space<vmem>>, vector<16x128xf32>,
    return
  }
  func.func @transform_0(%arg0: i32) -> (i32, i32) {
    %c0_i32 = arith.constant 0 : i32
    %c0_i32_0 = arith.constant 0 : i32
    return %arg0, %c0_i32 : i32, i32
  }
  func.func @transform_1(%arg0: i32) -> (i32, i32) {
    %c0_i32 = arith.constant 0 : i32
    %c0_i32_0 = arith.constant 0 : i32
    return %arg0, %c0_i32 : i32, i32
  }
}

</mosaic_0001>

<bundles_post_ra>
// kernel: tpu_custom_call.1
= control target key start
LH: loop header
LB: loop body
LE: loop exit
PB: predicated region body
PF: predicated region fallthrough
CT: control target
= control target key end

     0   :  { %6 = vsyncpa [#allocation3], 0  ;;  %s460_s0 = inlined_call_operand.hbm [shape: f32[16,128], index: 0, kind: input, shape index: {}]   ;;  %s461_s1 = inlined_call_operand.hbm [shape: f32[16,128], index: 1, kind: output, shape index: {}]  }
   0x1   :  { %7 = vsyncpa [#allocation4], 0  ;;  %s338_s6 = smov [#allocation2]   ;;  %s290_s10 = scalar_lea.hbm %s460_s0, 256 }
   0x2   :  { %s13_s7 = sshll.u32 %s338_s6, 4  ;;  %p291_p0 = scmp.ne.s32.totalorder %s460_s0, %s290_s10  ;;  %s14_s7 = int_to_ptr.vmem [resolvable:$true] %s13_s7 }
   0x3   :  { %p294_p1 = scmp.lt.u32.totalorder %s290_s10, %s460_s0 }
   0x5   :  { %p296_p2 = pnand %p294_p1, %p291_p0 }
   0x7   :  { %299 = shalt.err (!%p296_p2)
}
   0x8   :  { %s300_s15 = scalar_lea.vmem %s14_s7, 256  ;;  %p305_p4 = scmp.lt.s32.totalorder %s14_s7, %s14_s7 }
   0x9   :  { %p301_p3 = scmp.ne.s32.totalorder %s14_s7, %s300_s15  ;;  %p306_p5 = scmp.lt.s32.totalorder %s300_s15, %s300_s15 }
   0xb   :  { %p307_p6 = por %p306_p5, %p305_p4 }
   0xd   :  { %p308_p7 = pnand %p307_p6, %p301_p3 }
   0xf   :  { %311 = shalt.err (!%p308_p7)
}
  0x10   :  { %s339_s16 = smov 128   ;;  %s340_s17 = smov 8  }
  0x11   :  { %19 = dma.hbm_to_vmem [thread:$0]  %s460_s0, 256, %s14_s7, [#allocation3], %s339_s16, %s339_s16, %s340_s17  }
  0x12   :  { %334 = dma.done.wait [#allocation3], 256  }
  0x13   :  { %335 = vsyncadd [#allocation3], 4294967040  ;;  %v373_v0 = vld [vmem:[#allocation2] sm:$0xff]  ;;  %v375_v1 = vld [vmem:[#allocation2 + $0x8] sm:$0xff]  ;;  %v341_v24 = vmov 683565275  }
  0x14   :  { %v25_v2 = vand.u32 2147483647, %v373_v0  ;;  %v28_v3 = vand.u32 2139095040, %v373_v0  ;;  %v129_v4 = vand.u32 2147483647, %v375_v1  ;;  %v132_v5 = vand.u32 2139095040, %v375_v1 }
  0x15   :  { %v342_v26 = vmov 2475754826   ;;  %v343_v28 = vmov 2131351028   ;;  %v344_v30 = vmov 2102212464  }
  0x16   :  { %v29_v6 = vshrl.u32 %v28_v3, 23  ;;  %v32_v7 = vand.u32 8388607, %v25_v2  ;;  %v133_v8 = vshrl.u32 %v132_v5, 23  ;;  %v136_v9 = vand.u32 8388607, %v129_v4 }
  0x17   :  { %v345_v32 = vmov 920167782   ;;  %v346_v40 = vmov 1326507024   ;;  %vm27_vm14 = vcmp.lt.s32.totalorder %v373_v0, 0  ;;  %s347_s0 = smov [#allocation5]  }
  0x18   :  { %v256_v10 = vadd.s32 4294967169, %v29_v6  ;;  %v260_v11 = vadd.s32 4294967169, %v133_v8  ;;  %v33_v13 = vor.u32 8388608, %v32_v7  ;;  %v137_v14 = vor.u32 8388608, %v136_v9  ;;  %s244_s20 = sshll.u32 %s347_s0, 4  ;;  %s245_s20 = int_to_ptr.vmem [resolvable:$true] %s244_s20 }
  0x19   :  { %vm26_vm15 = vcmp.le.f32.partialorder %v25_v2, 0.7853982  ;;  %s312_s21 = scalar_lea.vmem %s245_s20, 256  ;;  %p317_p9 = scmp.lt.s32.totalorder %s245_s20, %s245_s20 }
  0x1a   :  { %v35_v12 = vadd.s32 1, %v256_v10  ;;  %v139_v15 = vadd.s32 1, %v260_v11  ;;  %v385_v20 = vshll.u32 %v33_v13, 8  ;;  %v387_v22 = vshll.u32 %v137_v14, 8  ;;  %p313_p8 = scmp.ne.s32.totalorder %s245_s20, %s312_s21  ;;  %p318_p10 = scmp.lt.s32.totalorder %s312_s21, %s312_s21 }
  0x1c   :  { %vm36_vm0 = vcmp.gt.s32.totalorder %v35_v12, 0  ;;  %vm140_vm1 = vcmp.gt.s32.totalorder %v139_v15, 0  ;;  %p319_p11 = por %p318_p10, %p317_p9 }
  0x1d   :  { %v37_v16 = vsel %vm36_vm0, %v35_v12, 0  ;;  %v141_v19 = vsel %vm140_vm1, %v139_v15, 0  ;;  %vm131_vm0 = vcmp.lt.s32.totalorder %v375_v1, 0  ;;  %vm130_vm1 = vcmp.le.f32.partialorder %v129_v4, 0.7853982 }
  0x1e   :  { %v38_v17 = vshrl.u32 %v37_v16, 5  ;;  %v39_v18 = vand.u32 31, %v37_v16  ;;  %v143_v21 = vand.u32 31, %v141_v19  ;;  %v389_v34 = vshrl.u32 %v141_v19, 5  ;;  %p320_p12 = pnand %p319_p11, %p313_p8 }
  0x20   :  { %v40_v23 = vsub.s32 32, %v39_v18  ;;  %v42_v25 = vshll.u32 %v341_v24, %v39_v18  ;;  %v45_v27 = vshll.u32 %v342_v26, %v39_v18  ;;  %v48_v29 = vshll.u32 %v343_v28, %v39_v18 }
  0x21   :  { %v51_v31 = vshll.u32 %v344_v30, %v39_v18  ;;  %v54_v33 = vshll.u32 %v345_v32, %v39_v18  ;;  %vm57_vm2 = vcmp.lt.s32.totalorder %v38_v17, 1  ;;  %vm58_vm3 = vcmp.lt.s32.totalorder %v38_v17, 2 }
  0x22   :  { %v41_v35 = vshrl.u32 %v341_v24, %v40_v23  ;;  %v43_v36 = vshrl.u32 %v342_v26, %v40_v23  ;;  %v46_v37 = vshrl.u32 %v343_v28, %v40_v23  ;;  %v49_v38 = vshrl.u32 %v344_v30, %v40_v23 }
  0x23   :  { %v52_v39 = vshrl.u32 %v345_v32, %v40_v23  ;;  %v55_v41 = vshrl.u32 %v346_v40, %v40_v23  ;;  %vm60_vm4 = vcmp.lt.s32.totalorder %v38_v17, 4  ;;  %v144_v45 = vsub.s32 32, %v143_v21 }
  0x24   :  { %v44_v42 = vor.u32 %v43_v36, %v42_v25  ;;  %v47_v43 = vor.u32 %v46_v37, %v45_v27  ;;  %v50_v44 = vor.u32 %v49_v38, %v48_v29  ;;  %vm59_vm5 = vcmp.lt.s32.totalorder %v38_v17, 3 }
  0x25   :  { %v53_v46 = vor.u32 %v52_v39, %v51_v31  ;;  %v56_v47 = vor.u32 %v55_v41, %v54_v33  ;;  %v146_v48 = vshll.u32 %v341_v24, %v143_v21  ;;  %v149_v56 = vshll.u32 %v342_v26, %v143_v21 }
  0x26   :  { %v61_v49 = vsel %vm57_vm2, %v41_v35, %v44_v42  ;;  %v62_v50 = vsel %vm60_vm4, %v50_v44, 2102212464  ;;  %v65_v51 = vsel %vm57_vm2, %v44_v42, %v47_v43  ;;  %v69_v52 = vsel %vm57_vm2, %v47_v43, %v50_v44 }
  0x27   :  { %v63_v53 = vsel %vm59_vm5, %v47_v43, %v62_v50  ;;  %v66_v54 = vsel %vm60_vm4, %v53_v46, 920167782  ;;  %v70_v55 = vsel %vm60_vm4, %v56_v47, 1326507024  ;;  %v145_v59 = vshrl.u32 %v341_v24, %v144_v45 }
  0x28   :  { %v67_v57 = vsel %vm59_vm5, %v50_v44, %v66_v54  ;;  %v71_v58 = vsel %vm59_vm5, %v53_v46, %v70_v55  ;;  %v147_v60 = vshrl.u32 %v342_v26, %v144_v45  ;;  %v64_v61 = vsel %vm58_vm3, %v61_v49, %v63_v53 }
  0x29   :  { %v68_v62 = vsel %vm58_vm3, %v65_v51, %v67_v57  ;;  %v72_v63 = vsel %vm58_vm3, %v69_v52, %v71_v58  ;;  %v150_v3 = vshrl.u32 %v343_v28, %v144_v45  ;;  %v152_v11 = vshll.u32 %v343_v28, %v143_v21 }
  0x2a   :  { %v398_v5 = vmul.u32.u64.low %v385_v20, %v72_v63  ;;  %v399_v6 = vmul.u32.u64.high %v385_v20, %v72_v63, %v398_v5  ;;  %v402_v7 = vmul.u32.u64.low %v385_v20, %v68_v62  ;;  %v403_v8 = vmul.u32.u64.high %v385_v20, %v68_v62, %v402_v7 }
  0x2b   :  { %v148_v9 = vor.u32 %v147_v60, %v146_v48  ;;  %v151_v10 = vor.u32 %v150_v3, %v149_v56  ;;  %v153_v12 = vshrl.u32 %v344_v30, %v144_v45  ;;  %v155_v13 = vshll.u32 %v344_v30, %v143_v21 }
  0x2c   :  { %v156_v14 = vshrl.u32 %v345_v32, %v144_v45  ;;  %v158_v15 = vshll.u32 %v345_v32, %v143_v21  ;;  %v159_v16 = vshrl.u32 %v346_v40, %v144_v45  ;;  %v80_v17 = vmul.u32 %v385_v20, %v64_v61 }
  0x2d   :  { %v154_v18 = vor.u32 %v153_v12, %v152_v11  ;;  %vm161_vm6 = vcmp.lt.s32.totalorder %v389_v34, 1  ;;  %vm162_vm7 = vcmp.lt.s32.totalorder %v389_v34, 2  ;;  %vm82_vm8 = vc.u32 %v399_v6, %v402_v7 }
  0x2e   :  { %v83_v19 = vadd.s32 1, %v403_v8  ;;  %v157_v23 = vor.u32 %v156_v14, %v155_v13  ;;  %vm163_vm9 = vcmp.lt.s32.totalorder %v389_v34, 3  ;;  %v160_v24 = vor.u32 %v159_v16, %v158_v15 }
  0x2f   :  { %vm164_vm10 = vcmp.lt.s32.totalorder %v389_v34, 4  ;;  %v165_v25 = vsel %vm161_vm6, %v145_v59, %v148_v9  ;;  %v169_v21 = vsel %vm161_vm6, %v148_v9, %v151_v10  ;;  %v173_v28 = vsel %vm161_vm6, %v151_v10, %v154_v18 }
  0x30   :  { %v84_v26 = vsel %vm82_vm8, %v83_v19, %v403_v8  ;;  %v166_v20 = vsel %vm164_vm10, %v154_v18, 2102212464  ;;  %v170_v27 = vsel %vm164_vm10, %v157_v23, 920167782  ;;  %v174_v32 = vsel %vm164_vm10, %v160_v24, 1326507024 }
  0x31   :  { %v85_v29 = vadd.s32 %v84_v26, %v80_v17  ;;  %v167_v30 = vsel %vm163_vm9, %v151_v10, %v166_v20  ;;  %v171_v31 = vsel %vm163_vm9, %v154_v18, %v170_v27  ;;  %v175_v36 = vsel %vm163_vm9, %v157_v23, %v174_v32 }
  0x32   :  { %v168_v33 = vsel %vm162_vm7, %v165_v25, %v167_v30  ;;  %v172_v35 = vsel %vm162_vm7, %v169_v21, %v171_v31  ;;  %v176_v38 = vsel %vm162_vm7, %v173_v28, %v175_v36  ;;  %v81_v57 = vadd.s32 %v402_v7, %v399_v6 }
  0x33   :  { %v86_v37 = vadd.s32 536870912, %v85_v29  ;;  %v420_v39 = vmul.u32.u64.low %v387_v22, %v172_v35  ;;  %v421_v40 = vmul.u32.u64.high %v387_v22, %v172_v35, %v420_v39  ;;  %v184_v44 = vmul.u32 %v387_v22, %v168_v33 }
  0x34   :  { %v424_v41 = vmul.u32.u64.low %v387_v22, %v176_v38  ;;  %v425_v42 = vmul.u32.u64.high %v387_v22, %v176_v38, %v424_v41  ;;  %vm117_vm5 = vweird.f32 %v373_v0  ;;  %vm221_vm9 = vweird.f32 %v375_v1 }
  0x35   :  { %v87_v43 = vshrl.u32 %v86_v37, 30  ;;  %v187_v46 = vadd.s32 1, %v421_v40 }
  0x36   :  { %vm186_vm11 = vc.u32 %v425_v42, %v420_v39  ;;  %v185_v13 = vadd.s32 %v420_v39, %v425_v42 }
  0x37   :  { %v88_v45 = vshll.u32 %v87_v43, 30  ;;  %v188_v34 = vsel %vm186_vm11, %v187_v46, %v421_v40  ;;  %v111_v6 = vsub.s32 4, %v87_v43 }
  0x38   :  { %v189_v48 = vadd.s32 %v188_v34, %v184_v44 }
  0x39   :  { %v89_v47 = vsub.s32 %v85_v29, %v88_v45  ;;  %v112_v25 = vsel %vm27_vm14, %v111_v6, %v87_v43 }
  0x3a   :  { %v190_v50 = vadd.s32 536870912, %v189_v48  ;;  %v114_v28 = vsel %vm26_vm15, 0, %v112_v25 }
  0x3b   :  { %v91_v49 = vsub.s32 0, %v89_v47  ;;  %v118_v33 = vadd.s32 3, %v114_v28 }
  0x3c   :  { %v191_v52 = vshrl.u32 %v190_v50, 30 }
  0x3d   :  { %v257_v51 = vmin.u32 %v91_v49, %v89_v47  ;;  %v119_v37 = vand.u32 3, %v118_v33 }
  0x3e   :  { %v192_v54 = vshll.u32 %v191_v52, 30  ;;  %v215_v32 = vsub.s32 4, %v191_v52 }
  0x3f   :  { %v93_v53 = vclz %v257_v51  ;;  %vm124_vm2 = vcmp.eq.s32.totalorder %v119_v37, 2  ;;  %vm121_vm3 = vcmp.eq.s32.totalorder %v119_v37, 0  ;;  %vm120_vm4 = vcmp.lt.s32.totalorder %v119_v37, 2 }
  0x40   :  { %v193_v56 = vsub.s32 %v189_v48, %v192_v54  ;;  %v216_v36 = vsel %vm131_vm0, %v215_v32, %v191_v52 }
  0x41   :  { %v258_v55 = vadd.s32 4294967294, %v93_v53  ;;  %v218_v40 = vsel %vm130_vm1, 0, %v216_v36 }
  0x42   :  { %v195_v58 = vsub.s32 0, %v193_v56  ;;  %v222_v44 = vadd.s32 3, %v218_v40 }
  0x43   :  { %vm259_vm12 = vcmp.lt.s32.totalorder %v258_v55, 0 }
  0x44   :  { %v96_v22 = vsel %vm259_vm12, 0, %v258_v55  ;;  %v261_v62 = vmin.u32 %v195_v58, %v193_v56  ;;  %v223_v34 = vand.u32 3, %v222_v44 }
  0x45   :  { %v97_v59 = vsub.s32 32, %v96_v22  ;;  %v98_v60 = vshll.u32 %v89_v47, %v96_v22  ;;  %v101_v61 = vsub.s32 4294967266, %v96_v22 }
  0x46   :  { %v197_v5 = vclz %v261_v62  ;;  %vm228_vm6 = vcmp.eq.s32.totalorder %v223_v34, 2  ;;  %vm225_vm7 = vcmp.eq.s32.totalorder %v223_v34, 0  ;;  %vm224_vm8 = vcmp.lt.s32.totalorder %v223_v34, 2 }
  0x47   :  { %v99_v63 = vshrl.u32 %v81_v57, %v97_v59  ;;  %v102_v3 = vadd.s32 127, %v101_v61 }
  0x48   :  { %v262_v10 = vadd.s32 4294967294, %v197_v5 }
  0x49   :  { %v100_v8 = vor.u32 %v99_v63, %v98_v60  ;;  %v103_v9 = vshll.u32 %v102_v3, 23 }
  0x4a   :  { %vm263_vm13 = vcmp.lt.s32.totalorder %v262_v10, 0 }
  0x4b   :  { %v104_v11 = vor.u32 4788187, %v103_v9  ;;  %v107_v12 = vcvt.s32.f32 %v100_v8  ;;  %v200_v7 = vsel %vm263_vm13, 0, %v262_v10 }
  0x4c   :  { %v201_v15 = vsub.s32 32, %v200_v7  ;;  %v202_v16 = vshll.u32 %v193_v56, %v200_v7  ;;  %v205_v17 = vsub.s32 4294967266, %v200_v7 }
  0x4d   :  { %v105_v14 = vand.u32 2147483647, %v104_v11 }
  0x4e   :  { %v203_v19 = vshrl.u32 %v185_v13, %v201_v15  ;;  %v206_v23 = vadd.s32 127, %v205_v17 }
  0x4f   :  { %v108_v18 = vmul.f32 %v107_v12, %v105_v14 }
  0x50   :  { %v204_v21 = vor.u32 %v203_v19, %v202_v16  ;;  %v207_v26 = vshll.u32 %v206_v23, 23 }
  0x51   :  { %v109_v24 = vxor.u32 2147483648, %v108_v18 }
  0x52   :  { %v208_v29 = vor.u32 4788187, %v207_v26  ;;  %v211_v30 = vcvt.s32.f32 %v204_v21 }
  0x53   :  { %v110_v20 = vsel %vm27_vm14, %v109_v24, %v108_v18 }
  0x54   :  { %v113_v27 = vsel %vm26_vm15, %v373_v0, %v110_v20  ;;  %v209_v31 = vand.u32 2147483647, %v208_v29 }
  0x55   :  { %282 = vcosq.f32 %v113_v27 }
  0x56   :  { %284 = vsinq.f32 %v113_v27  ;;  %v212_v35 = vmul.f32 %v211_v30, %v209_v31 }
  0x58   :  { %v213_v2 = vxor.u32 2147483648, %v212_v35 }
  0x5a   :  { %v214_v38 = vsel %vm131_vm0, %v213_v2, %v212_v35 }
  0x5b   :  { %v217_v39 = vsel %vm130_vm1, %v375_v1, %v214_v38 }
  0x5c   :  { %286 = vcosq.f32 %v217_v39 }
  0x5d   :  { %288 = vsinq.f32 %v217_v39 }
  0x5f   :  { %v283_v41 = vpop.eup %282 }
  0x60   :  { %v285_v42 = vpop.eup %284  ;;  %v125_v43 = vxor.u32 2147483648, %v283_v41 }
  0x61   :  { %v122_v45 = vxor.u32 2147483648, %v285_v42 }
  0x62   :  { %v126_v4 = vsel %vm124_vm2, %v125_v43, %v285_v42 }
  0x63   :  { %v123_v46 = vsel %vm121_vm3, %v283_v41, %v122_v45 }
  0x64   :  { %v127_v47 = vsel %vm120_vm4, %v123_v46, %v126_v4 }
  0x65   :  { %v128_v48 = vsel %vm117_vm5, nan, %v127_v47 }
  0x66   :  { %v233_v49 = vmul.f32 %v128_v48, %v128_v48  ;;  %v287_v50 = vpop.eup %286 }
  0x67   :  { %v289_v52 = vpop.eup %288  ;;  %v229_v53 = vxor.u32 2147483648, %v287_v50 }
  0x68   :  { %v235_v51 = vadd.f32 %v233_v49, %v373_v0  ;;  %v226_v54 = vxor.u32 2147483648, %v289_v52 }
  0x69   :  { %v230_v55 = vsel %vm228_vm6, %v229_v53, %v289_v52 }
  0x6a   :  { %237 = vst [vmem:[#allocation5] sm:$0xff] %v235_v51  ;;  %v227_v56 = vsel %vm225_vm7, %v287_v50, %v226_v54 }
  0x6b   :  { %v231_v57 = vsel %vm224_vm8, %v227_v56, %v230_v55 }
  0x6c   :  { %v232_v22 = vsel %vm221_vm9, nan, %v231_v57 }
  0x6d   :  { %v234_v58 = vmul.f32 %v232_v22, %v232_v22 }
  0x6f   :  { %v236_v59 = vadd.f32 %v234_v58, %v375_v1 }
  0x71   :  { %238 = vst [vmem:[#allocation5 + $0x8] sm:$0xff] %v236_v59 }
  0x72   :  { %323 = shalt.err (!%p320_p12)
}
  0x73   :  { %s324_s24 = scalar_lea.hbm %s461_s1, 256 }
  0x74   :  { %p325_p13 = scmp.ne.s32.totalorder %s461_s1, %s324_s24  ;;  %p328_p0 = scmp.lt.u32.totalorder %s324_s24, %s461_s1 }
  0x76   :  { %p330_p1 = pnand %p328_p0, %p325_p13 }
  0x78   :  { %333 = shalt.err (!%p330_p1)
}
  0x79   :  { %250 = dma.vmem_to_hbm [thread:$0]  %s245_s20, 256, %s461_s1, [#allocation4], %s339_s16, %s339_s16, %s340_s17  }
  0x7a   :  { %336 = dma.done.wait [#allocation4], 256  }
  0x7b   :  { %337 = vsyncadd [#allocation4], 4294967040 }
  0x7c   :  { %254 = vsyncpa [#allocation3], 1 }
  0x7d   :  { %255 = vsyncpa [#allocation4], 1 }

</bundles_post_ra>
